<compile_context>
chip_gen: v7x
topology: tpu7x:2x2x1
jax: 0.10.0
libtpu: 0.0.40
codegen_flags: <defaults>
</compile_context>

<pallas_src>
import numpy as np
import jax
import jax.numpy as jnp
from jax.experimental import pallas as pl
from jax.experimental.pallas import tpu as pltpu

LANE = 128


def _round_up(x, m):
    return (x + m - 1) // m * m


def _vmem_limit_bytes():
    """Generation-aware VMEM budget: ~75% of physical, fallback = v7x 64 MiB."""
    cap = None
    try:
        cap = getattr(pltpu.get_tpu_info(), "vmem_capacity_bytes", None)
    except Exception:
        cap = None
    if not cap:
        cap = 64 * 1024 * 1024
    return int(cap) * 3 // 4


def _make_kernel(B, L, Cip, Cop, K, d1, d2, eps):
    """Fused block kernel for static shapes (channels pre-padded to 128 lanes)."""
    N = B * L

    def bn_train(x2d, scale_row, shift_row):
        # x2d: (N, Cop) f32.  Training-mode batch stats, centered form
        # (avoids E[x^2]-E[x]^2 cancellation), biased variance like torch.
        # rsqrt lands on the EUP slot; one scale/shift FMA per element.
        m = jnp.mean(x2d, axis=0, keepdims=True)
        xc = x2d - m
        v = jnp.mean(xc * xc, axis=0, keepdims=True)
        s = scale_row * jax.lax.rsqrt(v + eps)          # (1, Cop)
        return xc * s + shift_row

    def kernel(xp_ref, w1c_ref, w1o_ref, w2_ref, bn_ref, o_ref, h_ref):
        bn = bn_ref[...]                                # (8, Cop) f32, one DMA

        # ---- conv1: per-tap accumulated matmuls; 1x1 shortcut fused onto ----
        # ---- the center tap via a 2*Cop-wide weight                      ----
        xc = xp_ref[:, d1:d1 + L, :].reshape(N, Cip)            # bf16
        accw = jnp.dot(xc, w1c_ref[...],
                       preferred_element_type=jnp.float32)      # (N, 2*Cop) f32
        acc1 = accw[:, :Cop]                                    # conv1 center tap
        acc3 = accw[:, Cop:]                                    # conv3 shortcut
        for t, k in ((0, 0), (1, K - 1)):                       # off-center taps
            xk = xp_ref[:, k * d1:k * d1 + L, :].reshape(N, Cip)
            acc1 = acc1 + jnp.dot(xk, w1o_ref[t],
                                  preferred_element_type=jnp.float32)

        # ---- bn1 (batch stats, f32) + relu ----------------------------------
        h1 = jnp.maximum(bn_train(acc1, bn[0:1], bn[1:2]), 0.0)

        # ---- conv2: bf16 halo scratch + per-tap accumulated matmuls ---------
        h_ref[...] = jnp.zeros_like(h_ref)                      # zero halo
        h_ref[:, d2:d2 + L, :] = h1.reshape(B, L, Cop).astype(h_ref.dtype)
        acc2 = jnp.dot(h_ref[:, 0:L, :].reshape(N, Cop), w2_ref[0],
                       preferred_element_type=jnp.float32)
        for k in range(1, K):
            lhs = h_ref[:, k * d2:k * d2 + L, :].reshape(N, Cop)
            acc2 = acc2 + jnp.dot(lhs, w2_ref[k],
                                  preferred_element_type=jnp.float32)

        # ---- bn2 / bn3, residual add, relu, one lane-dense bf16 store -------
        h2 = bn_train(acc2, bn[2:3], bn[3:4])
        ident = bn_train(acc3, bn[4:5], bn[5:6])
        out = jnp.maximum(h2 + ident, 0.0)
        o_ref[...] = out.reshape(B, L, Cop).astype(o_ref.dtype)

    return kernel


def basic_block_dilated(x_nlc, w1, g1, b1, w2, g2, b2, w3, g3, b3,
                        *, dilations=(1, 2), eps=1e-5):
    """x_nlc: (B, L, Cin).  w1: (K, Cin, Cout), w2: (K, Cout, Cout), w3: (1, Cin, Cout)."""
    B, L, Cin = x_nlc.shape
    K, _, Cout = w1.shape
    d1, d2 = dilations
    assert K == 3, "padding == dilation gives 'same' output length only for kernel_size=3"

    Cip = _round_up(Cin, LANE)     # lane-dense input channels
    Cop = _round_up(Cout, LANE)    # lane-dense output channels

    # Pre-pad x: halo along L for conv1, zero-pad channels to 128 lanes, bf16.
    xp = jnp.pad(x_nlc.astype(jnp.float32),
                 ((0, 0), (d1, d1), (0, Cip - Cin))).astype(jnp.bfloat16)

    # conv1 weights (K, Cip, Cop); center tap widened with the 1x1 shortcut
    # columns (no all-zero taps), off-center taps kept separately.
    w1p = jnp.pad(w1, ((0, 0), (0, Cip - Cin), (0, Cop - Cout)))          # (K, Cip, Cop)
    w3p = jnp.pad(w3[0], ((0, Cip - Cin), (0, Cop - Cout)))               # (Cip, Cop)
    w1c = jnp.concatenate([w1p[K // 2], w3p], axis=-1).astype(jnp.bfloat16)   # (Cip, 2*Cop)
    w1o = jnp.stack([w1p[0], w1p[K - 1]]).astype(jnp.bfloat16)                # (2, Cip, Cop)

    w2p = (jnp.pad(w2, ((0, 0), (0, Cop - Cout), (0, Cop - Cout)))
           .astype(jnp.bfloat16))                                             # (K, Cop, Cop)

    # Pack the six BN gamma/beta rows into a single (8, Cop) f32 tile.
    row = lambda v: jnp.pad(v.astype(jnp.float32), (0, Cop - Cout))
    zero_row = jnp.zeros((Cop,), jnp.float32)
    bn_rows = jnp.stack([row(g1), row(b1), row(g2), row(b2),
                         row(g3), row(b3), zero_row, zero_row])               # (8, Cop)

    kernel = _make_kernel(B, L, Cip, Cop, K, d1, d2, eps)
    vmem = lambda: pl.BlockSpec(memory_space=pltpu.MemorySpace.VMEM)

    out = pl.pallas_call(
        kernel,
        out_shape=jax.ShapeDtypeStruct((B, L, Cop), jnp.bfloat16),
        in_specs=[vmem() for _ in range(5)],
        out_specs=vmem(),
        scratch_shapes=[pltpu.VMEM((B, L + 2 * d2, Cop), jnp.bfloat16)],
        compiler_params=pltpu.CompilerParams(
            vmem_limit_bytes=_vmem_limit_bytes()),
    )(xp, w1c, w1o, w2p, bn_rows)

    # Strip lane padding; padded channels are exactly zero by construction.
    return out[:, :, :Cout].astype(x_nlc.dtype)


# ------------------------- pure-JAX reference (NCL, torch semantics) --------
def _conv1d_ncl(x, w, stride, pad, dil):
    return jax.lax.conv_general_dilated(
        x, w, window_strides=(stride,), padding=[(pad, pad)],
        rhs_dilation=(dil,), dimension_numbers=("NCH", "OIH", "NCH"),
        precision=jax.lax.Precision.HIGHEST)


def _bn_train_ncl(x, g, b, eps=1e-5):
    m = jnp.mean(x, axis=(0, 2), keepdims=True)
    v = jnp.mean((x - m) ** 2, axis=(0, 2), keepdims=True)
    return (x - m) / jnp.sqrt(v + eps) * g[None, :, None] + b[None, :, None]


def reference_ncl(x, w1, g1, b1, w2, g2, b2, w3, g3, b3,
                  *, dilations=(1, 2), eps=1e-5):
    d1, d2 = dilations
    out = _conv1d_ncl(x, w1, 1, d1, d1)
    out = jnp.maximum(_bn_train_ncl(out, g1, b1, eps), 0.0)
    out = _conv1d_ncl(out, w2, 1, d2, d2)
    out = _bn_train_ncl(out, g2, b2, eps)
    ident = _bn_train_ncl(_conv1d_ncl(x, w3, 1, 0, 1), g3, b3, eps)
    return jnp.maximum(out + ident, 0.0)


if __name__ == "__main__":
    # Small shapes consistent with BasicBlockDilated(inplanes=4, planes=8,
    # stage=0, block=0, kernel_size=3, dilations=(1, 2))  -> stride = 1.
    B, Cin, Cout, L, K = 2, 4, 8, 16, 3
    dilations = (1, 2)

    key = jax.random.PRNGKey(0)
    ks = jax.random.split(key, 12)
    x_ncl = jax.random.normal(ks[0], (B, Cin, L), jnp.float32)

    # Deterministic synthetic parameters (torch layouts: conv weight = (Cout, Cin, K)).
    w1_t = 0.3 * jax.random.normal(ks[1], (Cout, Cin, K), jnp.float32)
    w2_t = 0.3 * jax.random.normal(ks[2], (Cout, Cout, K), jnp.float32)
    w3_t = 0.3 * jax.random.normal(ks[3], (Cout, Cin, 1), jnp.float32)
    g1 = 1.0 + 0.1 * jax.random.normal(ks[4], (Cout,), jnp.float32)
    b1 = 0.1 * jax.random.normal(ks[5], (Cout,), jnp.float32)
    g2 = 1.0 + 0.1 * jax.random.normal(ks[6], (Cout,), jnp.float32)
    b2 = 0.1 * jax.random.normal(ks[7], (Cout,), jnp.float32)
    g3 = 1.0 + 0.1 * jax.random.normal(ks[8], (Cout,), jnp.float32)
    b3 = 0.1 * jax.random.normal(ks[9], (Cout,), jnp.float32)

    # Kernel-side layouts: NLC activations, (K, Cin, Cout) weights.
    x_nlc = jnp.transpose(x_ncl, (0, 2, 1))
    w1_k = jnp.transpose(w1_t, (2, 1, 0))   # (K, Cin, Cout)
    w2_k = jnp.transpose(w2_t, (2, 1, 0))   # (K, Cout, Cout)
    w3_k = jnp.transpose(w3_t, (2, 1, 0))   # (1, Cin, Cout)

    out_nlc = basic_block_dilated(x_nlc, w1_k, g1, b1, w2_k, g2, b2,
                                  w3_k, g3, b3, dilations=dilations)
    out_nlc = jax.block_until_ready(out_nlc)

    ref_ncl = reference_ncl(x_ncl, w1_t, g1, b1, w2_t, g2, b2, w3_t, g3, b3,
                            dilations=dilations)
    ref_nlc = jnp.transpose(ref_ncl, (0, 2, 1))

    # Note: kernel uses bf16 MXU operands and a bf16 output store (deliberate
    # precision drop vs the fp32-HIGHEST reference); tolerance reflects that.
    np.testing.assert_allclose(np.asarray(out_nlc), np.asarray(ref_nlc),
                               rtol=2e-2, atol=2e-2)
    print("KERNEL_OK")
</pallas_src>

<mosaic_0001>
module attributes {stable_mosaic.version = 11 : i64} {
  func.func @kernel(%arg0: memref<2x18x128xbf16, #tpu.memory_space<vmem>>, %arg1: memref<128x256xbf16, #tpu.memory_space<vmem>>, %arg2: memref<2x128x128xbf16, #tpu.memory_space<vmem>>, %arg3: memref<3x128x128xbf16, #tpu.memory_space<vmem>>, %arg4: memref<8x128xf32, #tpu.memory_space<vmem>>, %arg5: memref<2x16x128xbf16, #tpu.memory_space<vmem>>, %arg6: memref<2x20x128xbf16, #tpu.memory_space<vmem>>) attributes {dimension_semantics = [], scalar_prefetch = 0 : i64, scratch_operands = 1 : i64, tpu.core_type = #tpu.core_type<tc>} {
    %c0 = arith.constant 0 : index
    %c0_0 = arith.constant 0 : index
    %0 = vector.load %arg4[%c0, %c0_0] : memref<8x128xf32, #tpu.memory_space<vmem>>, vector<8x128xf32>
    %c0_1 = arith.constant 0 : index
    %c1 = arith.constant 1 : index
    %c0_2 = arith.constant 0 : index
    %1 = vector.load %arg0[%c0_1, %c1, %c0_2] : memref<2x18x128xbf16, #tpu.memory_space<vmem>>, vector<2x16x128xbf16>
    %2 = vector.shape_cast %1 : vector<2x16x128xbf16> to vector<32x128xbf16>
    %c0_3 = arith.constant 0 : index
    %c0_4 = arith.constant 0 : index
    %3 = vector.load %arg1[%c0_3, %c0_4] : memref<128x256xbf16, #tpu.memory_space<vmem>>, vector<128x256xbf16>
    %cst = arith.constant dense<0.000000e+00> : vector<32x256xf32>
    %4 = tpu.matmul %2, %3, %cst {dimension_numbers = #tpu.dot_dimension_numbers<[1], [0], [0], [1], [0, 0, 1, 1], [], []>} : vector<32x128xbf16>, vector<128x256xbf16>, vector<32x256xf32> -> vector<32x256xf32>
    %5 = vector.extract_strided_slice %4 {offsets = [0, 0], sizes = [32, 128], strides = [1, 1]} : vector<32x256xf32> to vector<32x128xf32>
    %6 = vector.extract_strided_slice %4 {offsets = [0, 128], sizes = [32, 128], strides = [1, 1]} : vector<32x256xf32> to vector<32x128xf32>
    %c0_5 = arith.constant 0 : index
    %c0_6 = arith.constant 0 : index
    %c0_7 = arith.constant 0 : index
    %7 = vector.load %arg0[%c0_5, %c0_6, %c0_7] : memref<2x18x128xbf16, #tpu.memory_space<vmem>>, vector<2x16x128xbf16>
    %8 = vector.shape_cast %7 : vector<2x16x128xbf16> to vector<32x128xbf16>
    %c0_8 = arith.constant 0 : index
    %c0_9 = arith.constant 0 : index
    %c0_10 = arith.constant 0 : index
    %9 = vector.load %arg2[%c0_8, %c0_9, %c0_10] : memref<2x128x128xbf16, #tpu.memory_space<vmem>>, vector<1x128x128xbf16>
    %10 = vector.shape_cast %9 : vector<1x128x128xbf16> to vector<128x128xbf16>
    %cst_11 = arith.constant dense<0.000000e+00> : vector<32x128xf32>
    %11 = tpu.matmul %8, %10, %cst_11 {dimension_numbers = #tpu.dot_dimension_numbers<[1], [0], [0], [1], [0, 0, 1, 1], [], []>} : vector<32x128xbf16>, vector<128x128xbf16>, vector<32x128xf32> -> vector<32x128xf32>
    %12 = arith.addf %5, %11 : vector<32x128xf32>
    %c0_12 = arith.constant 0 : index
    %c2 = arith.constant 2 : index
    %c0_13 = arith.constant 0 : index
    %13 = vector.load %arg0[%c0_12, %c2, %c0_13] : memref<2x18x128xbf16, #tpu.memory_space<vmem>>, vector<2x16x128xbf16>
    %14 = vector.shape_cast %13 : vector<2x16x128xbf16> to vector<32x128xbf16>
    %c1_14 = arith.constant 1 : index
    %c0_15 = arith.constant 0 : index
    %c0_16 = arith.constant 0 : index
    %15 = vector.load %arg2[%c1_14, %c0_15, %c0_16] : memref<2x128x128xbf16, #tpu.memory_space<vmem>>, vector<1x128x128xbf16>
    %16 = vector.shape_cast %15 : vector<1x128x128xbf16> to vector<128x128xbf16>
    %cst_17 = arith.constant dense<0.000000e+00> : vector<32x128xf32>
    %17 = tpu.matmul %14, %16, %cst_17 {dimension_numbers = #tpu.dot_dimension_numbers<[1], [0], [0], [1], [0, 0, 1, 1], [], []>} : vector<32x128xbf16>, vector<128x128xbf16>, vector<32x128xf32> -> vector<32x128xf32>
    %18 = arith.addf %12, %17 : vector<32x128xf32>
    %19 = vector.extract_strided_slice %0 {offsets = [0, 0], sizes = [1, 128], strides = [1, 1]} : vector<8x128xf32> to vector<1x128xf32>
    %20 = vector.extract_strided_slice %0 {offsets = [1, 0], sizes = [1, 128], strides = [1, 1]} : vector<8x128xf32> to vector<1x128xf32>
    %cst_18 = arith.constant dense<0.000000e+00> : vector<128xf32>
    %21 = vector.multi_reduction <add>, %18, %cst_18 [0] : vector<32x128xf32> to vector<128xf32>
    %22 = vector.shape_cast %21 : vector<128xf32> to vector<1x128xf32>
    %cst_19 = arith.constant 3.200000e+01 : f32
    %23 = vector.broadcast %cst_19 : f32 to vector<1x128xf32>
    %24 = arith.divf %22, %23 : vector<1x128xf32>
    %25 = vector.broadcast %24 : vector<1x128xf32> to vector<32x128xf32>
    %26 = arith.subf %18, %25 : vector<32x128xf32>
    %27 = arith.mulf %26, %26 : vector<32x128xf32>
    %cst_20 = arith.constant dense<0.000000e+00> : vector<128xf32>
    %28 = vector.multi_reduction <add>, %27, %cst_20 [0] : vector<32x128xf32> to vector<128xf32>
    %29 = vector.shape_cast %28 : vector<128xf32> to vector<1x128xf32>
    %cst_21 = arith.constant 3.200000e+01 : f32
    %30 = vector.broadcast %cst_21 : f32 to vector<1x128xf32>
    %31 = arith.divf %29, %30 : vector<1x128xf32>
    %cst_22 = arith.constant 9.99999974E-6 : f32
    %32 = vector.broadcast %cst_22 : f32 to vector<1x128xf32>
    %33 = arith.addf %31, %32 : vector<1x128xf32>
    %34 = math.rsqrt %33 : vector<1x128xf32>
    %35 = arith.mulf %19, %34 : vector<1x128xf32>
    %36 = vector.broadcast %35 : vector<1x128xf32> to vector<32x128xf32>
    %37 = arith.mulf %26, %36 : vector<32x128xf32>
    %38 = vector.broadcast %20 : vector<1x128xf32> to vector<32x128xf32>
    %39 = arith.addf %37, %38 : vector<32x128xf32>
    %cst_23 = arith.constant 0.000000e+00 : f32
    %40 = vector.broadcast %cst_23 : f32 to vector<32x128xf32>
    %41 = arith.maximumf %39, %40 : vector<32x128xf32>
    %cst_24 = arith.constant 0.000000e+00 : bf16
    %42 = vector.broadcast %cst_24 : bf16 to vector<2x20x128xbf16>
    %c0_25 = arith.constant 0 : index
    %c0_26 = arith.constant 0 : index
    %c0_27 = arith.constant 0 : index
    %43 = vector.load %arg6[%c0_25, %c0_26, %c0_27] : memref<2x20x128xbf16, #tpu.memory_space<vmem>>, vector<2x20x128xbf16>
    tpu.vector_store %arg6[%c0_25, %c0_26, %c0_27], %42 {strides = array<i32>} : memref<2x20x128xbf16, #tpu.memory_space<vmem>>, vector<2x20x128xbf16>,
    %44 = vector.shape_cast %41 : vector<32x128xf32> to vector<2x16x128xf32>
    %45 = arith.truncf %44 : vector<2x16x128xf32> to vector<2x16x128xbf16>
    %c0_28 = arith.constant 0 : index
    %c2_29 = arith.constant 2 : index
    %c0_30 = arith.constant 0 : index
    %46 = vector.load %arg6[%c0_28, %c2_29, %c0_30] : memref<2x20x128xbf16, #tpu.memory_space<vmem>>, vector<2x16x128xbf16>
    tpu.vector_store %arg6[%c0_28, %c2_29, %c0_30], %45 {strides = array<i32>} : memref<2x20x128xbf16, #tpu.memory_space<vmem>>, vector<2x16x128xbf16>,
    %c0_31 = arith.constant 0 : index
    %c0_32 = arith.constant 0 : index
    %c0_33 = arith.constant 0 : index
    %47 = vector.load %arg6[%c0_31, %c0_32, %c0_33] : memref<2x20x128xbf16, #tpu.memory_space<vmem>>, vector<2x16x128xbf16>
    %48 = vector.shape_cast %47 : vector<2x16x128xbf16> to vector<32x128xbf16>
    %c0_34 = arith.constant 0 : index
    %c0_35 = arith.constant 0 : index
    %c0_36 = arith.constant 0 : index
    %49 = vector.load %arg3[%c0_34, %c0_35, %c0_36] : memref<3x128x128xbf16, #tpu.memory_space<vmem>>, vector<1x128x128xbf16>
    %50 = vector.shape_cast %49 : vector<1x128x128xbf16> to vector<128x128xbf16>
    %cst_37 = arith.constant dense<0.000000e+00> : vector<32x128xf32>
    %51 = tpu.matmul %48, %50, %cst_37 {dimension_numbers = #tpu.dot_dimension_numbers<[1], [0], [0], [1], [0, 0, 1, 1], [], []>} : vector<32x128xbf16>, vector<128x128xbf16>, vector<32x128xf32> -> vector<32x128xf32>
    %c0_38 = arith.constant 0 : index
    %c2_39 = arith.constant 2 : index
    %c0_40 = arith.constant 0 : index
    %52 = vector.load %arg6[%c0_38, %c2_39, %c0_40] : memref<2x20x128xbf16, #tpu.memory_space<vmem>>, vector<2x16x128xbf16>
    %53 = vector.shape_cast %52 : vector<2x16x128xbf16> to vector<32x128xbf16>
    %c1_41 = arith.constant 1 : index
    %c0_42 = arith.constant 0 : index
    %c0_43 = arith.constant 0 : index
    %54 = vector.load %arg3[%c1_41, %c0_42, %c0_43] : memref<3x128x128xbf16, #tpu.memory_space<vmem>>, vector<1x128x128xbf16>
    %55 = vector.shape_cast %54 : vector<1x128x128xbf16> to vector<128x128xbf16>
    %cst_44 = arith.constant dense<0.000000e+00> : vector<32x128xf32>
    %56 = tpu.matmul %53, %55, %cst_44 {dimension_numbers = #tpu.dot_dimension_numbers<[1], [0], [0], [1], [0, 0, 1, 1], [], []>} : vector<32x128xbf16>, vector<128x128xbf16>, vector<32x128xf32> -> vector<32x128xf32>
    %57 = arith.addf %51, %56 : vector<32x128xf32>
    %c0_45 = arith.constant 0 : index
    %c4 = arith.constant 4 : index
    %c0_46 = arith.constant 0 : index
    %58 = vector.load %arg6[%c0_45, %c4, %c0_46] : memref<2x20x128xbf16, #tpu.memory_space<vmem>>, vector<2x16x128xbf16>
    %59 = vector.shape_cast %58 : vector<2x16x128xbf16> to vector<32x128xbf16>
    %c2_47 = arith.constant 2 : index
    %c0_48 = arith.constant 0 : index
    %c0_49 = arith.constant 0 : index
    %60 = vector.load %arg3[%c2_47, %c0_48, %c0_49] : memref<3x128x128xbf16, #tpu.memory_space<vmem>>, vector<1x128x128xbf16>
    %61 = vector.shape_cast %60 : vector<1x128x128xbf16> to vector<128x128xbf16>
    %cst_50 = arith.constant dense<0.000000e+00> : vector<32x128xf32>
    %62 = tpu.matmul %59, %61, %cst_50 {dimension_numbers = #tpu.dot_dimension_numbers<[1], [0], [0], [1], [0, 0, 1, 1], [], []>} : vector<32x128xbf16>, vector<128x128xbf16>, vector<32x128xf32> -> vector<32x128xf32>
    %63 = arith.addf %57, %62 : vector<32x128xf32>
    %64 = vector.extract_strided_slice %0 {offsets = [2, 0], sizes = [1, 128], strides = [1, 1]} : vector<8x128xf32> to vector<1x128xf32>
    %65 = vector.extract_strided_slice %0 {offsets = [3, 0], sizes = [1, 128], strides = [1, 1]} : vector<8x128xf32> to vector<1x128xf32>
    %cst_51 = arith.constant dense<0.000000e+00> : vector<128xf32>
    %66 = vector.multi_reduction <add>, %63, %cst_51 [0] : vector<32x128xf32> to vector<128xf32>
    %67 = vector.shape_cast %66 : vector<128xf32> to vector<1x128xf32>
    %cst_52 = arith.constant 3.200000e+01 : f32
    %68 = vector.broadcast %cst_52 : f32 to vector<1x128xf32>
    %69 = arith.divf %67, %68 : vector<1x128xf32>
    %70 = vector.broadcast %69 : vector<1x128xf32> to vector<32x128xf32>
    %71 = arith.subf %63, %70 : vector<32x128xf32>
    %72 = arith.mulf %71, %71 : vector<32x128xf32>
    %cst_53 = arith.constant dense<0.000000e+00> : vector<128xf32>
    %73 = vector.multi_reduction <add>, %72, %cst_53 [0] : vector<32x128xf32> to vector<128xf32>
    %74 = vector.shape_cast %73 : vector<128xf32> to vector<1x128xf32>
    %cst_54 = arith.constant 3.200000e+01 : f32
    %75 = vector.broadcast %cst_54 : f32 to vector<1x128xf32>
    %76 = arith.divf %74, %75 : vector<1x128xf32>
    %cst_55 = arith.constant 9.99999974E-6 : f32
    %77 = vector.broadcast %cst_55 : f32 to vector<1x128xf32>
    %78 = arith.addf %76, %77 : vector<1x128xf32>
    %79 = math.rsqrt %78 : vector<1x128xf32>
    %80 = arith.mulf %64, %79 : vector<1x128xf32>
    %81 = vector.broadcast %80 : vector<1x128xf32> to vector<32x128xf32>
    %82 = arith.mulf %71, %81 : vector<32x128xf32>
    %83 = vector.broadcast %65 : vector<1x128xf32> to vector<32x128xf32>
    %84 = arith.addf %82, %83 : vector<32x128xf32>
    %85 = vector.extract_strided_slice %0 {offsets = [4, 0], sizes = [1, 128], strides = [1, 1]} : vector<8x128xf32> to vector<1x128xf32>
    %86 = vector.extract_strided_slice %0 {offsets = [5, 0], sizes = [1, 128], strides = [1, 1]} : vector<8x128xf32> to vector<1x128xf32>
    %cst_56 = arith.constant dense<0.000000e+00> : vector<128xf32>
    %87 = vector.multi_reduction <add>, %6, %cst_56 [0] : vector<32x128xf32> to vector<128xf32>
    %88 = vector.shape_cast %87 : vector<128xf32> to vector<1x128xf32>
    %cst_57 = arith.constant 3.200000e+01 : f32
    %89 = vector.broadcast %cst_57 : f32 to vector<1x128xf32>
    %90 = arith.divf %88, %89 : vector<1x128xf32>
    %91 = vector.broadcast %90 : vector<1x128xf32> to vector<32x128xf32>
    %92 = arith.subf %6, %91 : vector<32x128xf32>
    %93 = arith.mulf %92, %92 : vector<32x128xf32>
    %cst_58 = arith.constant dense<0.000000e+00> : vector<128xf32>
    %94 = vector.multi_reduction <add>, %93, %cst_58 [0] : vector<32x128xf32> to vector<128xf32>
    %95 = vector.shape_cast %94 : vector<128xf32> to vector<1x128xf32>
    %cst_59 = arith.constant 3.200000e+01 : f32
    %96 = vector.broadcast %cst_59 : f32 to vector<1x128xf32>
    %97 = arith.divf %95, %96 : vector<1x128xf32>
    %cst_60 = arith.constant 9.99999974E-6 : f32
    %98 = vector.broadcast %cst_60 : f32 to vector<1x128xf32>
    %99 = arith.addf %97, %98 : vector<1x128xf32>
    %100 = math.rsqrt %99 : vector<1x128xf32>
    %101 = arith.mulf %85, %100 : vector<1x128xf32>
    %102 = vector.broadcast %101 : vector<1x128xf32> to vector<32x128xf32>
    %103 = arith.mulf %92, %102 : vector<32x128xf32>
    %104 = vector.broadcast %86 : vector<1x128xf32> to vector<32x128xf32>
    %105 = arith.addf %103, %104 : vector<32x128xf32>
    %106 = arith.addf %84, %105 : vector<32x128xf32>
    %cst_61 = arith.constant 0.000000e+00 : f32
    %107 = vector.broadcast %cst_61 : f32 to vector<32x128xf32>
    %108 = arith.maximumf %106, %107 : vector<32x128xf32>
    %109 = vector.shape_cast %108 : vector<32x128xf32> to vector<2x16x128xf32>
    %110 = arith.truncf %109 : vector<2x16x128xf32> to vector<2x16x128xbf16>
    %c0_62 = arith.constant 0 : index
    %c0_63 = arith.constant 0 : index
    %c0_64 = arith.constant 0 : index
    %111 = vector.load %arg5[%c0_62, %c0_63, %c0_64] : memref<2x16x128xbf16, #tpu.memory_space<vmem>>, vector<2x16x128xbf16>
    tpu.vector_store %arg5[%c0_62, %c0_63, %c0_64], %110 {strides = array<i32>} : memref<2x16x128xbf16, #tpu.memory_space<vmem>>, vector<2x16x128xbf16>,
    return
  }
}

</mosaic_0001>

<bundles_post_ra>
// kernel: tpu_custom_call.1
= control target key start
LH: loop header
LB: loop body
LE: loop exit
PB: predicated region body
PF: predicated region fallthrough
CT: control target
= control target key end

     0   :  { %10 = vsyncpa [#allocation4], 0  ;;  %s1895_s0 = inlined_call_operand.vmem [shape: bf16[2,18,128], index: 0, kind: input, shape index: {}]   ;;  %s1896_s1 = inlined_call_operand.hbm [shape: bf16[128,256], index: 1, kind: input, shape index: {}]   ;;  %s1897_s2 = inlined_call_operand.hbm [shape: bf16[2,128,128], index: 2, kind: input, shape index: {}]   ;;  %s1898_s3 = inlined_call_operand.hbm [shape: bf16[3,128,128], index: 3, kind: input, shape index: {}]   ;;  %s1899_s4 = inlined_call_operand.vmem [shape: f32[8,128], index: 4, kind: input, shape index: {}]   ;;  %s1900_s5 = inlined_call_operand.hbm [shape: bf16[2,16,128], index: 5, kind: output, shape index: {}]  }
   0x1   :  { %11 = vsyncpa [#allocation7], 0 }
   0x2   :  { %12 = vsyncpa [#allocation5], 0  ;;  %s1657_s18 = smov [#allocation6]   ;;  %s1563_s22 = scalar_lea.hbm %s1897_s2, 2048 }
   0x3   :  { %s32_s19 = sshll.u32 %s1657_s18, 4  ;;  %p1564_p0 = scmp.ne.s32.totalorder %s1897_s2, %s1563_s22  ;;  %s33_s19 = int_to_ptr.vmem [resolvable:$true] %s32_s19 }
   0x4   :  { %p1567_p1 = scmp.lt.u32.totalorder %s1563_s22, %s1897_s2 }
   0x6   :  { %p1569_p2 = pnand %p1567_p1, %p1564_p0 }
   0x8   :  { %1572 = shalt.err (!%p1569_p2)
}
   0x9   :  { %s1573_s27 = scalar_lea.vmem %s33_s19, 2048  ;;  %p1578_p4 = scmp.lt.s32.totalorder %s33_s19, %s33_s19 }
   0xa   :  { %p1574_p3 = scmp.ne.s32.totalorder %s33_s19, %s1573_s27  ;;  %p1579_p5 = scmp.lt.s32.totalorder %s1573_s27, %s1573_s27 }
   0xc   :  { %p1580_p6 = por %p1579_p5, %p1578_p4 }
   0xe   :  { %p1581_p7 = pnand %p1580_p6, %p1574_p3 }
  0x10   :  { %1584 = shalt.err (!%p1581_p7)
}
  0x11   :  { %s1658_s28 = smov 64   ;;  %s1659_s29 = smov 4  }
  0x12   :  { %38 = dma.hbm_to_vmem [thread:$0]  %s1897_s2, 2048, %s33_s19, [#allocation7], %s1658_s28, %s1658_s28, %s1659_s29  }
  0x13   :  { %s1660_s7 = smov [#allocation3]   ;;  %s1585_s11 = scalar_lea.hbm %s1896_s1, 2048 }
  0x14   :  { %s20_s8 = sshll.u32 %s1660_s7, 4  ;;  %p1586_p8 = scmp.ne.s32.totalorder %s1896_s1, %s1585_s11  ;;  %s21_s8 = int_to_ptr.vmem [resolvable:$true] %s20_s8 }
  0x15   :  { %p1589_p9 = scmp.lt.u32.totalorder %s1585_s11, %s1896_s1 }
  0x17   :  { %p1591_p10 = pnand %p1589_p9, %p1586_p8 }
  0x19   :  { %1594 = shalt.err (!%p1591_p10)
}
  0x1a   :  { %s1595_s16 = scalar_lea.vmem %s21_s8, 2048  ;;  %p1600_p12 = scmp.lt.s32.totalorder %s21_s8, %s21_s8 }
  0x1b   :  { %p1596_p11 = scmp.ne.s32.totalorder %s21_s8, %s1595_s16  ;;  %p1601_p13 = scmp.lt.s32.totalorder %s1595_s16, %s1595_s16 }
  0x1d   :  { %p1602_p0 = por %p1601_p13, %p1600_p12 }
  0x1f   :  { %p1603_p1 = pnand %p1602_p0, %p1596_p11 }
  0x21   :  { %1606 = shalt.err (!%p1603_p1)
}
  0x22   :  { %s1661_s2 = smov 128   ;;  %s1662_s17 = smov 8  }
  0x23   :  { %26 = dma.hbm_to_vmem [thread:$0]  %s1896_s1, 2048, %s21_s8, [#allocation4], %s1661_s2, %s1661_s2, %s1662_s17  }
  0x24   :  { %s1663_s20 = smov [#allocation8]   ;;  %s1607_s24 = scalar_lea.hbm %s1898_s3, 3072 }
  0x25   :  { %s44_s21 = sshll.u32 %s1663_s20, 4  ;;  %p1608_p2 = scmp.ne.s32.totalorder %s1898_s3, %s1607_s24  ;;  %s45_s21 = int_to_ptr.vmem [resolvable:$true] %s44_s21 }
  0x26   :  { %p1611_p3 = scmp.lt.u32.totalorder %s1607_s24, %s1898_s3 }
  0x28   :  { %p1613_p4 = pnand %p1611_p3, %p1608_p2 }
  0x2a   :  { %1616 = shalt.err (!%p1613_p4)
}
  0x2b   :  { %s1617_s6 = scalar_lea.vmem %s45_s21, 3072  ;;  %p1622_p6 = scmp.lt.s32.totalorder %s45_s21, %s45_s21 }
  0x2c   :  { %p1618_p5 = scmp.ne.s32.totalorder %s45_s21, %s1617_s6  ;;  %p1623_p7 = scmp.lt.s32.totalorder %s1617_s6, %s1617_s6 }
  0x2e   :  { %p1624_p8 = por %p1623_p7, %p1622_p6 }
  0x30   :  { %p1625_p9 = pnand %p1624_p8, %p1618_p5 }
  0x32   :  { %1628 = shalt.err (!%p1625_p9)
}
  0x33   :  { %50 = dma.hbm_to_vmem [thread:$0]  %s1898_s3, 3072, %s45_s21, [#allocation7], %s1658_s28, %s1658_s28, %s1659_s29  }
  0x34   :  { %1651 = dma.done.wait [#allocation4], 2048  }
  0x35   :  { %1652 = vsyncadd [#allocation4], 4294965248 }
  0x36   :  { %1653 = dma.done.wait [#allocation7], 5120  }
  0x37   :  { %1654 = vsyncadd [#allocation7], 4294962176  ;;  %v1664_v0 = vmov 0   ;;  %v1489_v1 = vld [vmem:[#allocation3 + $0x4] ss:$8 sps:$4 sm:$0xff]   ;;  %v1515_v59 = vld [vmem:[#allocation6 + $0x10] sm:$0xff]  }
  0x38   :  { %257 = vmatprep.mubr.bf16.mxu0 %v1664_v0  ;;  %614 = vst [vmem:[#allocation2] sm:$0xf] %v1664_v0  ;;  %615 = vst [vmem:[#allocation2 + $0x4] sm:$0xf] %v1664_v0  ;;  %v1491_v2 = vld [vmem:[#allocation3] ss:$8 sps:$4 sm:$0xff]   ;;  %225 = vmatprep.subr.bf16.mxu0 %v1489_v1 }
  0x39   :  { %616 = vst [vmem:[#allocation2 + $0x8] sm:$0x3] %v1664_v0  ;;  %617 = vst [vmem:[#allocation2 + $0xc] sm:$0xf] %v1664_v0  ;;  %v1492_v3 = vld [vmem:[#allocation3 + $0x14] ss:$8 sps:$4 sm:$0xff]   ;;  %226 = vmatpush1.bf16.msra.mxu0 %v1491_v2 }
  0x3a   :  { %618 = vst [vmem:[#allocation2 + $0x10] sm:$0xf] %v1664_v0  ;;  %619 = vst [vmem:[#allocation2 + $0x14] sm:$0x3] %v1664_v0  ;;  %v1494_v4 = vld [vmem:[#allocation3 + $0x10] ss:$8 sps:$4 sm:$0xff]   ;;  %227 = vmatprep.subr.bf16.mxu0 %v1492_v3 }
  0x3b   :  { %v1495_v5 = vld [vmem:[#allocation3 + $0x24] ss:$8 sps:$4 sm:$0xff]   ;;  %v1497_v6 = vld [vmem:[#allocation3 + $0x20] ss:$8 sps:$4 sm:$0xff]   ;;  %v1498_v7 = vld [vmem:[#allocation3 + $0x34] ss:$8 sps:$4 sm:$0xff]  }
  0x3c   :  { %v1500_v8 = vld [vmem:[#allocation3 + $0x30] ss:$8 sps:$4 sm:$0xff]   ;;  %v64_v9 = vld [vmem:[%s1895_s0] sm:$0xf]  ;;  %v1501_v10 = vld [vmem:[#allocation3 + $0x44] ss:$8 sps:$4 sm:$0xff]  }
  0x3d   :  { %228 = vmatpush1.bf16.msra.mxu0 %v1494_v4  ;;  %v1751_v11 = vld [vmem:[%s1895_s0 + $0x4] sm:$0xf]  ;;  %v74_v12 = vshrl.u32 %v64_v9, 16  ;;  %v77_v13 = vshll.u32 %v64_v9, 16  ;;  %v1756_v14 = vld [vmem:[%s1895_s0 + $0x8] sm:$0x1] }
  0x3e   :  { %229 = vmatprep.subr.bf16.mxu0 %v1495_v5  ;;  %v83_v15 = vshll.u32 %v1751_v11, 16  ;;  %v87_v16 = vshrl.u32 %v1751_v11, 16  ;;  %vm70_vm0 = vsmask.f32 3328  ;;  %v1503_v21 = vld [vmem:[#allocation3 + $0x40] ss:$8 sps:$4 sm:$0xff]  }
  0x3f   :  { %v76_v17 = vrot.slane %v74_v12, 4  ;;  %v79_v18 = vrot.slane %v77_v13, 5  ;;  %v93_v22 = vshll.u32 %v1756_v14, 16  ;;  %v67_v23 = vld [vmem:[%s1895_s0 + $0xc] sm:$0xf]  ;;  %v1513_v51 = vld [vmem:[#allocation6] sm:$0xff]  }
  0x40   :  { %v85_v19 = vrot.slane %v83_v15, 5  ;;  %v89_v20 = vrot.slane %v87_v16, 4  ;;  %v1504_v24 = vld [vmem:[#allocation3 + $0x54] ss:$8 sps:$4 sm:$0xff]   ;;  %v1767_v25 = vld [vmem:[%s1895_s0 + $0x10] sm:$0xf] }
  0x41   :  { %230 = vmatpush1.bf16.msra.mxu0 %v1497_v6  ;;  %v1506_v26 = vld [vmem:[#allocation3 + $0x50] ss:$8 sps:$4 sm:$0xff]   ;;  %vm71_vm1 = vsmask.f32 7440  ;;  %v80_v27 = vor.u32 %v79_v18, %v76_v17  ;;  %v1507_v29 = vld [vmem:[#allocation3 + $0x64] ss:$8 sps:$4 sm:$0xff]  }
  0x42   :  { %231 = vmatprep.subr.bf16.mxu0 %v1498_v7  ;;  %v90_v28 = vor.u32 %v89_v20, %v85_v19  ;;  %v98_v30 = vshrl.u32 %v67_v23, 16  ;;  %v101_v31 = vshll.u32 %v67_v23, 16  ;;  %v95_v32 = vrot.slane %v93_v22, 5  ;;  %v1509_v35 = vld [vmem:[#allocation3 + $0x60] ss:$8 sps:$4 sm:$0xff]   ;;  %vm1778_vm2 = vmor %vm70_vm0, %vm71_vm1  ;;  %v1516_v62 = vld [vmem:[#allocation6 + $0x18] sm:$0xff]  }
  0x43   :  { %v107_v33 = vshll.u32 %v1767_v25, 16  ;;  %v111_v34 = vshrl.u32 %v1767_v25, 16  ;;  %v81_v36 = vrot.slane %v80_v27, 4  ;;  %v1774_v38 = vld [vmem:[%s1895_s0 + $0x14] sm:$0x1]  ;;  %v1514_v56 = vld [vmem:[#allocation6 + $0x8] sm:$0xff]  }
  0x44   :  { %v91_v37 = vrot.slane %v90_v28, 4  ;;  %v100_v39 = vrot.slane %v98_v30, 4  ;;  %v103_v40 = vrot.slane %v101_v31, 5  ;;  %v1510_v44 = vld [vmem:[#allocation3 + $0x74] ss:$8 sps:$4 sm:$0xff]   ;;  %v117_v45 = vshll.u32 %v1774_v38, 16 }
  0x45   :  { %232 = vmatpush1.bf16.msra.mxu0 %v1500_v8  ;;  %v109_v42 = vrot.slane %v107_v33, 5  ;;  %v113_v43 = vrot.slane %v111_v34, 4  ;;  %v1512_v46 = vld [vmem:[#allocation3 + $0x70] ss:$8 sps:$4 sm:$0xff]   ;;  %v86_v47 = vsel %vm1778_vm2, %v81_v36, %v85_v19  ;;  %v1521_v60 = vld [vmem:[%s1895_s0] sm:$0xff]   ;;  %v1517_v63 = vld [vmem:[#allocation6 + $0x20] sm:$0xff]  }
  0x46   :  { %233 = vmatprep.subr.bf16.mxu0 %v1501_v10  ;;  %v96_v48 = vsel %vm1778_vm2, %v91_v37, %v95_v32  ;;  %v104_v49 = vor.u32 %v103_v40, %v100_v39  ;;  %v119_v53 = vrot.slane %v117_v45, 5  ;;  %v1519_v1 = vld [vmem:[#allocation6 + $0x30] sm:$0xff]   ;;  %v424_v2 = vrot.slane %v1751_v11, 5  ;;  %v411_v3 = vld [vmem:[%s1895_s0] sm:$0xe]  ;;  %v1520_v4 = vld [vmem:[#allocation6 + $0x38] sm:$0xff]  }
  0x47   :  { %v114_v50 = vor.u32 %v113_v43, %v109_v42  ;;  %v1221_v52 = vcombine.low %v86_v47, %v96_v48  ;;  %vm419_vm3 = vcmask 1042432   ;;  %vm420_vm4 = vcmask 1046532   ;;  %v1523_v9 = vld [vmem:[#allocation6 + $0x40] sm:$0xff]   ;;  %v1522_v12 = vld [vmem:[%s1895_s0 + $0xc] sm:$0xff]   ;;  %v1528_v18 = vld [vmem:[#allocation6 + $0x68] sm:$0xff]  }
  0x48   :  { %v105_v54 = vrot.slane %v104_v49, 4  ;;  %v1249_v5 = vrot.slane %v411_v3, 9  ;;  %v426_v6 = vrot.slane %v424_v2, 4  ;;  %v427_v7 = vrot.slane %v1756_v14, 5  ;;  %vm1800_vm5 = vmor %vm419_vm3, %vm420_vm4  ;;  %v1524_v14 = vld [vmem:[#allocation6 + $0x48] sm:$0xff]   ;;  %v1525_v15 = vld [vmem:[#allocation6 + $0x50] sm:$0xff]  }
  0x49   :  { %234 = vmatpush1.bf16.msra.mxu0 %v1503_v21  ;;  %v115_v55 = vrot.slane %v114_v50, 4  ;;  %v1526_v16 = vld [vmem:[#allocation6 + $0x58] sm:$0xff]   ;;  %v1527_v17 = vld [vmem:[#allocation6 + $0x60] sm:$0xff]   ;;  %v431_v19 = vrot.slane %v1767_v25, 5  ;;  %v1529_v20 = vld [vmem:[#allocation6 + $0x70] sm:$0xff]   ;;  %v434_v22 = vrot.slane %v1774_v38, 5 }
  0x4a   :  { %235 = vmatprep.subr.bf16.mxu0 %v1504_v24  ;;  %v110_v57 = vsel %vm1778_vm2, %v105_v54, %v109_v42  ;;  %v425_v10 = vsel %vm1800_vm5, %v1249_v5, %v424_v2  ;;  %v428_v11 = vsel %vm1800_vm5, %v426_v6, %v427_v7  ;;  %v412_v21 = vld [vmem:[%s1895_s0 + $0xc] sm:$0xe]  ;;  %v1532_v32 = vld [vmem:[#allocation8 + $0x48] sm:$0xff]   ;;  %v1534_v39 = vld [vmem:[#allocation8 + $0x58] sm:$0xff]   ;;  %vm632_vm6 = vcmask 1040384  }
  0x4b   :  { %v120_v58 = vsel %vm1778_vm2, %v115_v55, %v119_v53  ;;  %v1251_v13 = vcombine.low %v425_v10, %v428_v11  ;;  %v1250_v23 = vrot.slane %v412_v21, 9  ;;  %v433_v24 = vrot.slane %v431_v19, 4  ;;  %v1533_v36 = vld [vmem:[#allocation8 + $0x50] sm:$0xff]   ;;  %v1536_v47 = vld [vmem:[#allocation8 + $0x68] sm:$0xff]  }
  0x4c   :  { %v1222_v61 = vcombine.low %v110_v57, %v120_v58  ;;  %v1537_v48 = vld [vmem:[#allocation8 + $0x70] sm:$0xff]   ;;  %vm633_vm7 = vcmask 1044484   ;;  %v1545_v8 = vld [vmem:[#allocation8 + $0x28] sm:$0xff]   ;;  %vm938_vm9 = vcmask 1041408   ;;  %vm939_vm10 = vcmask 1045508  }
  0x4d   :  { %236 = vmatpush1.bf16.msra.mxu0 %v1506_v26  ;;  %v1530_v26 = vld [vmem:[#allocation6 + $0x78] sm:$0xff]   ;;  %v432_v27 = vsel %vm1800_vm5, %v1250_v23, %v431_v19  ;;  %v435_v25 = vsel %vm1800_vm5, %v433_v24, %v434_v22  ;;  %v1828_v22 = vld [vmem:[%s1899_s4] sm:$0xff]  ;;  %vm634_vm8 = vmor %vm632_vm6, %vm633_vm7  ;;  %s1665_s4 = smov [#allocation9]  }
  0x4e   :  { %237 = vmatprep.subr.bf16.mxu0 %v1507_v29  ;;  %v1252_v28 = vcombine.low %v432_v27, %v435_v25  ;;  %v1531_v29 = vld [vmem:[#allocation8 + $0x40] sm:$0xff]   ;;  %vm1856_vm11 = vmor %vm938_vm9, %vm939_vm10  ;;  %s1208_s27 = sshll.u32 %s1665_s4, 4  ;;  %s1209_s27 = int_to_ptr.vmem [resolvable:$true] %s1208_s27 }
  0x4f   :  { %1412 = vmatprep.subr.bf16.mxu1 %v1531_v29  ;;  %s1629_s30 = scalar_lea.vmem %s1209_s27, 256  ;;  %p1634_p11 = scmp.lt.s32.totalorder %s1209_s27, %s1209_s27 }
  0x50   :  { %1413 = vmatpush3.bf16.msra.mxu1 %v1531_v29  ;;  %p1630_p10 = scmp.ne.s32.totalorder %s1209_s27, %s1629_s30  ;;  %p1635_p12 = scmp.lt.s32.totalorder %s1629_s30, %s1629_s30 }
  0x51   :  { %238 = vmatpush1.bf16.msra.mxu0 %v1509_v35  ;;  %1414 = vmatprep.subr.bf16.mxu1 %v1532_v32 }
  0x52   :  { %239 = vmatprep.subr.bf16.mxu0 %v1510_v44  ;;  %v1535_v44 = vld [vmem:[#allocation8 + $0x60] sm:$0xff]   ;;  %p1636_p13 = por %p1635_p12, %p1634_p11 }
  0x54   :  { %1415 = vmatpush3.bf16.msra.mxu1 %v1532_v32  ;;  %p1637_p0 = pnand %p1636_p13, %p1630_p10 }
  0x55   :  { %240 = vmatpush1.bf16.msra.mxu0 %v1512_v46  ;;  %1416 = vmatprep.subr.bf16.mxu1 %v1533_v36 }
  0x56   :  { %1372 = vmatprep.subr.bf16.mxu0 %v1513_v51 }
  0x58   :  { %258 = vmatmul.mubr.bf16.vlgmr.msra.gmra.mrb[0].mxu0 %v1221_v52  ;;  %1417 = vmatpush3.bf16.msra.mxu1 %v1533_v36 }
  0x59   :  { %1373 = vmatpush3.bf16.msra.mxu0 %v1513_v51  ;;  %267 = vmatprep.mubr.bf16.mxu0 %v1664_v0  ;;  %v1518_v0 = vld [vmem:[#allocation6 + $0x28] sm:$0xff]   ;;  %v1538_v51 = vld [vmem:[#allocation8 + $0x78] sm:$0xff]  }
  0x5a   :  { %1374 = vmatprep.subr.bf16.mxu0 %v1514_v56  ;;  %1418 = vmatprep.subr.bf16.mxu1 %v1534_v39 }
  0x5c   :  { %1419 = vmatpush3.bf16.msra.mxu1 %v1534_v39 }
  0x5d   :  { %1375 = vmatpush3.bf16.msra.mxu0 %v1514_v56  ;;  %1420 = vmatprep.subr.bf16.mxu1 %v1535_v44 }
  0x5e   :  { %1376 = vmatprep.subr.bf16.mxu0 %v1515_v59 }
  0x60   :  { %268 = vmatmul.mubr.bf16.gmra.mrb[4].mxu0 %v1222_v61  ;;  %1421 = vmatpush3.bf16.msra.mxu1 %v1535_v44 }
  0x61   :  { %1377 = vmatpush3.bf16.msra.mxu0 %v1515_v59  ;;  %1388 = vmatprep.mubr.bf16.mxu0 %v1521_v60  ;;  %v1820_v59 = vld [vmem:[#allocation8] sm:$0xff]  }
  0x62   :  { %1378 = vmatprep.subr.bf16.mxu0 %v1516_v62  ;;  %1422 = vmatprep.subr.bf16.mxu1 %v1536_v47 }
  0x64   :  { %1423 = vmatpush3.bf16.msra.mxu1 %v1536_v47 }
  0x65   :  { %1379 = vmatpush3.bf16.msra.mxu0 %v1516_v62  ;;  %1424 = vmatprep.subr.bf16.mxu1 %v1537_v48 }
  0x66   :  { %1380 = vmatprep.subr.bf16.mxu0 %v1517_v63 }
  0x68   :  { %1425 = vmatpush3.bf16.msra.mxu1 %v1537_v48 }
  0x69   :  { %1381 = vmatpush3.bf16.msra.mxu0 %v1517_v63  ;;  %1426 = vmatprep.subr.bf16.mxu1 %v1538_v51 }
  0x6a   :  { %1382 = vmatprep.subr.bf16.mxu0 %v1518_v0 }
  0x6c   :  { %1427 = vmatpush3.bf16.msra.mxu1 %v1538_v51 }
  0x6d   :  { %1383 = vmatpush3.bf16.msra.mxu0 %v1518_v0  ;;  %1432 = vmatprep.subr.bf16.mxu1 %v1820_v59 }
  0x6e   :  { %1384 = vmatprep.subr.bf16.mxu0 %v1519_v1 }
  0x71   :  { %1385 = vmatpush3.bf16.msra.mxu0 %v1519_v1 }
  0x72   :  { %1386 = vmatprep.subr.bf16.mxu0 %v1520_v4 }
  0x75   :  { %1387 = vmatpush3.bf16.msra.mxu0 %v1520_v4 }
  0x76   :  { %1392 = vmatprep.subr.bf16.mxu0 %v1523_v9 }
  0x78   :  { %1389 = vmatmul.mubr.bf16.vlgmr.msra.gmra.mrb[8].mxu0 %v1522_v12 }
  0x79   :  { %1393 = vmatpush3.bf16.msra.mxu0 %v1523_v9  ;;  %1408 = vmatprep.mubr.bf16.mxu0 %v1251_v13 }
  0x7a   :  { %1394 = vmatprep.subr.bf16.mxu0 %v1524_v14 }
  0x7d   :  { %1395 = vmatpush3.bf16.msra.mxu0 %v1524_v14 }
  0x7e   :  { %1396 = vmatprep.subr.bf16.mxu0 %v1525_v15 }
  0x81   :  { %1397 = vmatpush3.bf16.msra.mxu0 %v1525_v15 }
  0x82   :  { %1398 = vmatprep.subr.bf16.mxu0 %v1526_v16 }
  0x85   :  { %1399 = vmatpush3.bf16.msra.mxu0 %v1526_v16 }
  0x86   :  { %1400 = vmatprep.subr.bf16.mxu0 %v1527_v17 }
  0x89   :  { %1401 = vmatpush3.bf16.msra.mxu0 %v1527_v17 }
  0x8a   :  { %1402 = vmatprep.subr.bf16.mxu0 %v1528_v18 }
  0x8d   :  { %1403 = vmatpush3.bf16.msra.mxu0 %v1528_v18 }
  0x8e   :  { %1404 = vmatprep.subr.bf16.mxu0 %v1529_v20 }
  0x91   :  { %1405 = vmatpush3.bf16.msra.mxu0 %v1529_v20  ;;  %v594_v20 = vlaneseq }
  0x92   :  { %1406 = vmatprep.subr.bf16.mxu0 %v1530_v26 }
  0x93   :  { %v1823_v21 = vshrl.u32 %v594_v20, 7 }
  0x95   :  { %1407 = vmatpush3.bf16.msra.mxu0 %v1530_v26  ;;  %v1161_v23 = vsub.s32 4, %v1823_v21 }
  0x98   :  { %1409 = vmatmul.mubr.bf16.vlgmr.msra.gmra.mrb[12].mxu0 %v1252_v28 }
 0x12b   :  { %v259_v30 = vpop.f32.mrb[0].mxu0 }
 0x12c   :  { %v261_v31 = vpop.f32.mrb[1].mxu0 }
 0x12d   :  { %v263_v33 = vpop.f32.mrb[2].mxu0 }
 0x12e   :  { %v265_v34 = vpop.f32.mrb[3].mxu0 }
 0x12f   :  { %v1128_v35 = vadd.f32 %v265_v34, %v261_v31 }
 0x133   :  { %v269_v37 = vpop.f32.mrb[4].mxu0 }
 0x134   :  { %v271_v38 = vpop.f32.mrb[5].mxu0 }
 0x135   :  { %v1129_v40 = vadd.f32 %v1128_v35, %v271_v38  ;;  %v273_v41 = vpop.f32.mrb[6].mxu0 }
 0x136   :  { %v275_v42 = vpop.f32.mrb[7].mxu0 }
 0x137   :  { %v1130_v43 = vadd.f32 %v1129_v40, %v275_v42 }
 0x139   :  { %v1131_v45 = vrot.slane %v1130_v43, 4 }
 0x13b   :  { %v1132_v46 = vadd.f32 %v1131_v45, %v1130_v43 }
 0x13d   :  { %v1133_v49 = vrot.slane %v1132_v46, 2 }
 0x13f   :  { %v1134_v50 = vadd.f32 %v1133_v49, %v1132_v46 }
 0x141   :  { %v1135_v52 = vrot.slane %v1134_v50, 1 }
 0x143   :  { %v1136_v53 = vadd.f32 %v1135_v52, %v1134_v50 }
 0x145   :  { %v1137_v54 = vmul.f32 0.03125, %v1136_v53 }
 0x147   :  { %v1138_v55 = vsub.f32 %v261_v31, %v1137_v54  ;;  %v1139_v56 = vsub.f32 %v265_v34, %v1137_v54  ;;  %v1140_v57 = vsub.f32 %v271_v38, %v1137_v54  ;;  %v1141_v58 = vsub.f32 %v275_v42, %v1137_v54 }
 0x149   :  { %v1142_v60 = vmul.f32 %v1138_v55, %v1138_v55  ;;  %v1143_v61 = vmul.f32 %v1139_v56, %v1139_v56  ;;  %v1144_v62 = vmul.f32 %v1140_v57, %v1140_v57  ;;  %v1145_v3 = vmul.f32 %v1141_v58, %v1141_v58 }
 0x14b   :  { %v1146_v63 = vadd.f32 %v1143_v61, %v1142_v60  ;;  %v1390_v0 = vpop.f32.mrb[8].mxu0 }
 0x14c   :  { %v409_v1 = vadd.f32 %v1390_v0, %v269_v37  ;;  %v392_v2 = vpop.f32.mrb[9].mxu0 }
 0x14d   :  { %v1147_v4 = vadd.f32 %v1146_v63, %v1144_v62  ;;  %v407_v5 = vadd.f32 %v392_v2, %v259_v30  ;;  %v1391_v6 = vpop.f32.mrb[10].mxu0 }
 0x14e   :  { %v410_v7 = vadd.f32 %v1391_v6, %v273_v41  ;;  %v395_v9 = vpop.f32.mrb[11].mxu0  ;;  %v604_v6 = vsub.s32 1, %v1823_v21 }
 0x14f   :  { %v1148_v10 = vadd.f32 %v1147_v4, %v1145_v3  ;;  %v408_v11 = vadd.f32 %v395_v9, %v263_v33 }
 0x151   :  { %v1149_v12 = vrot.slane %v1148_v10, 4 }
 0x153   :  { %v1150_v13 = vadd.f32 %v1149_v12, %v1148_v10 }
 0x155   :  { %v1151_v14 = vrot.slane %v1150_v13, 2 }
 0x157   :  { %v1152_v15 = vadd.f32 %v1151_v14, %v1150_v13 }
 0x159   :  { %v1153_v16 = vrot.slane %v1152_v15, 1 }
 0x15b   :  { %v1154_v17 = vadd.f32 %v1153_v16, %v1152_v15 }
 0x15d   :  { %v1155_v18 = vmul.f32 0.03125, %v1154_v17 }
 0x15f   :  { %v1156_v19 = vadd.f32 1e-05, %v1155_v18 }
 0x161   :  { %1557 = vrsqrt.f32 %v1156_v19 }
 0x16b   :  { %v1558_v24 = vpop.eup %1557  ;;  %v1410_v26 = vpop.f32.mrb[12].mxu0 }
 0x16c   :  { %v1158_v27 = vmul.f32 %v1558_v24, %v1828_v22  ;;  %v560_v25 = vadd.f32 %v1410_v26, %v409_v1  ;;  %v543_v28 = vpop.f32.mrb[13].mxu0 }
 0x16d   :  { %v558_v29 = vadd.f32 %v543_v28, %v407_v5  ;;  %v1411_v30 = vpop.f32.mrb[14].mxu0  ;;  %v596_v5 = vsub.s32 0, %v1823_v21 }
 0x16e   :  { %v1162_v31 = vrot.slane %v1158_v27, %v1161_v23  ;;  %v561_v32 = vadd.f32 %v1411_v30, %v410_v7  ;;  %v546_v33 = vpop.f32.mrb[15].mxu0 }
 0x16f   :  { %v559_v34 = vadd.f32 %v546_v33, %v408_v11  ;;  %v605_v11 = vrot.slane %v1828_v22, %v604_v6  ;;  %v1544_v6 = vld [vmem:[#allocation8 + $0x20] sm:$0xff]  }
 0x170   :  { %v1832_v35 = vmul.f32 %v1162_v31, %v1141_v58  ;;  %v1834_v36 = vmul.f32 %v1162_v31, %v1139_v56  ;;  %v1836_v37 = vmul.f32 %v1162_v31, %v1138_v55  ;;  %v1838_v38 = vmul.f32 %v1162_v31, %v1140_v57 }
 0x171   :  { %v562_v39 = vadd.f32 %v559_v34, %v558_v29 }
 0x173   :  { %v563_v40 = vadd.f32 %v562_v39, %v560_v25 }
 0x175   :  { %v564_v41 = vadd.f32 %v563_v40, %v561_v32 }
 0x177   :  { %v565_v42 = vrot.slane %v564_v41, 4 }
 0x179   :  { %v566_v43 = vadd.f32 %v565_v42, %v564_v41 }
 0x17b   :  { %v567_v44 = vrot.slane %v566_v43, 2 }
 0x17d   :  { %v568_v45 = vadd.f32 %v567_v44, %v566_v43 }
 0x17f   :  { %v569_v46 = vrot.slane %v568_v45, 1 }
 0x181   :  { %v570_v47 = vadd.f32 %v569_v46, %v568_v45 }
 0x183   :  { %v572_v48 = vmul.f32 0.03125, %v570_v47 }
 0x185   :  { %v573_v49 = vsub.f32 %v558_v29, %v572_v48  ;;  %v574_v50 = vsub.f32 %v559_v34, %v572_v48  ;;  %v575_v51 = vsub.f32 %v560_v25, %v572_v48  ;;  %v576_v52 = vsub.f32 %v561_v32, %v572_v48 }
 0x187   :  { %v577_v53 = vmul.f32 %v573_v49, %v573_v49  ;;  %v578_v54 = vmul.f32 %v574_v50, %v574_v50  ;;  %v579_v55 = vmul.f32 %v575_v51, %v575_v51  ;;  %v580_v57 = vmul.f32 %v576_v52, %v576_v52 }
 0x189   :  { %v581_v56 = vadd.f32 %v578_v54, %v577_v53 }
 0x18b   :  { %v582_v58 = vadd.f32 %v581_v56, %v579_v55 }
 0x18d   :  { %v583_v60 = vadd.f32 %v582_v58, %v580_v57 }
 0x18f   :  { %v584_v61 = vrot.slane %v583_v60, 4 }
 0x191   :  { %v585_v62 = vadd.f32 %v584_v61, %v583_v60 }
 0x193   :  { %v586_v63 = vrot.slane %v585_v62, 2 }
 0x195   :  { %v587_v0 = vadd.f32 %v586_v63, %v585_v62 }
 0x197   :  { %v588_v1 = vrot.slane %v587_v0, 1 }
 0x199   :  { %v589_v2 = vadd.f32 %v588_v1, %v587_v0 }
 0x19b   :  { %v590_v3 = vmul.f32 0.03125, %v589_v2  ;;  %v1541_v2 = vld [vmem:[#allocation8 + $0x8] sm:$0xff]  }
 0x19d   :  { %v591_v4 = vadd.f32 1e-05, %v590_v3 }
 0x19f   :  { %1559 = vrsqrt.f32 %v591_v4  ;;  %v1542_v4 = vld [vmem:[#allocation8 + $0x10] sm:$0xff]  }
 0x1a9   :  { %v1560_v7 = vpop.eup %1559 }
 0x1aa   :  { %v593_v9 = vmul.f32 %v1560_v7, %v1828_v22  ;;  %v1546_v7 = vld [vmem:[#allocation8 + $0x30] sm:$0xff]  }
 0x1ac   :  { %v597_v10 = vrot.slane %v593_v9, %v596_v5  ;;  %v1543_v5 = vld [vmem:[#allocation8 + $0x18] sm:$0xff]  }
 0x1ae   :  { %v598_v12 = vmul.f32 %v597_v10, %v573_v49  ;;  %v599_v13 = vmul.f32 %v597_v10, %v574_v50  ;;  %v600_v14 = vmul.f32 %v597_v10, %v575_v51  ;;  %v601_v15 = vmul.f32 %v597_v10, %v576_v52  ;;  %v1547_v10 = vld [vmem:[#allocation8 + $0x38] sm:$0xff]  }
 0x1b0   :  { %v606_v16 = vadd.f32 %v605_v11, %v598_v12  ;;  %v607_v17 = vadd.f32 %v605_v11, %v599_v13  ;;  %v608_v18 = vadd.f32 %v605_v11, %v600_v14  ;;  %v609_v19 = vadd.f32 %v605_v11, %v601_v15  ;;  %v1549_v13 = vld [vmem:[#allocation8 + $0x80] sm:$0xff]  }
 0x1b1   :  { %v1122_v15 = vsub.s32 3, %v1823_v21 }
 0x1b2   :  { %v610_v20 = vmax.f32 %v606_v16, 0.0  ;;  %v611_v23 = vmax.f32 %v607_v17, 0.0  ;;  %v612_v24 = vmax.f32 %v608_v18, 0.0  ;;  %v613_v26 = vmax.f32 %v609_v19, 0.0 }
 0x1b4   :  { %v1303_v27 = vpack.c.bf16 %v610_v20, %v610_v20  ;;  %v1304_v25 = vpack.c.bf16 %v611_v23, %v611_v23  ;;  %v1305_v28 = vpack.c.bf16 %v612_v24, %v612_v24  ;;  %v1306_v29 = vpack.c.bf16 %v613_v26, %v613_v26  ;;  %v1550_v23 = vld [vmem:[#allocation8 + $0x88] sm:$0xff]   ;;  %v1551_v26 = vld [vmem:[#allocation8 + $0x90] sm:$0xff]  }
 0x1b6   :  { %v635_v30 = vrot.slane %v1303_v27, 7  ;;  %v637_v31 = vrot.slane %v1304_v25, 7  ;;  %v640_v32 = vrot.slane %v1305_v28, 7  ;;  %v642_v33 = vrot.slane %v1306_v29, 7  ;;  %v1552_v27 = vld [vmem:[#allocation8 + $0x98] sm:$0xff]   ;;  %v1553_v25 = vld [vmem:[#allocation8 + $0xa0] sm:$0xff]  }
 0x1b7   :  { %v1554_v28 = vld [vmem:[#allocation8 + $0xa8] sm:$0xff]   ;;  %v1555_v29 = vld [vmem:[#allocation8 + $0xb0] sm:$0xff]  }
 0x1b8   :  { %v636_v34 = vrot.slane %v635_v30, 4  ;;  %v639_v39 = vrot.slane %v637_v31, 4  ;;  %v641_v40 = vrot.slane %v640_v32, 4  ;;  %v644_v41 = vrot.slane %v642_v33, 4  ;;  %651 = vst [vmem:[#allocation2] sm:$0xe] %v635_v30 }
 0x1b9   :  { %654 = vst [vmem:[#allocation2 + $0xc] sm:$0xe] %v640_v32 }
 0x1ba   :  { %v638_v42 = vsel %vm634_vm8, %v636_v34, %v637_v31  ;;  %v643_v43 = vsel %vm634_vm8, %v641_v40, %v642_v33  ;;  %653 = vst [vmem:[#allocation2 + $0x8] sm:$0x1] %v639_v39  ;;  %656 = vst [vmem:[#allocation2 + $0x14] sm:$0x1] %v644_v41  ;;  %v1556_v31 = vld [vmem:[#allocation8 + $0xb8] sm:$0xff]  }
 0x1bb   :  { %652 = vst [vmem:[#allocation2 + $0x4] sm:$0xf] %v638_v42  ;;  %655 = vst [vmem:[#allocation2 + $0x10] sm:$0xf] %v643_v43 }
 0x1bf   :  { %v677_v44 = vld [vmem:[#allocation2] sm:$0xe] }
 0x1c0   :  { %v679_v46 = vld [vmem:[#allocation2 + $0xc] sm:$0xe]  ;;  %v1265_v52 = vrot.slane %v677_v44, 9  ;;  %v657_v1 = vld [vmem:[#allocation2] sm:$0xf] }
 0x1c1   :  { %v678_v45 = vld [vmem:[#allocation2 + $0x8] sm:$0x1]  ;;  %v680_v49 = vld [vmem:[#allocation2 + $0x14] sm:$0x1]  ;;  %v1266_v53 = vrot.slane %v679_v46, 9 }
 0x1c2   :  { %v658_v47 = vld [vmem:[#allocation2 + $0x4] sm:$0xf]  ;;  %v1844_v48 = vld [vmem:[#allocation2 + $0x10] sm:$0xf]  ;;  %v692_v55 = vrot.slane %v678_v45, 5  ;;  %v699_v57 = vrot.slane %v680_v49, 5 }
 0x1c3   :  { %v689_v50 = vrot.slane %v658_v47, 5  ;;  %v696_v51 = vrot.slane %v1844_v48, 5  ;;  %v1277_v3 = vcombine.low %v657_v1, %v658_v47  ;;  %v943_v9 = vrot.slane %v658_v47, 6  ;;  %v930_v12 = vld [vmem:[#allocation2] sm:$0xc] }
 0x1c4   :  { %v1287_v16 = vrot.slane %v930_v12, 10  ;;  %v659_v18 = vld [vmem:[#allocation2 + $0xc] sm:$0xf]  ;;  %v950_v30 = vrot.slane %v1844_v48, 6  ;;  %v933_v32 = vld [vmem:[#allocation2 + $0x14] sm:$0x3] }
 0x1c5   :  { %v691_v54 = vrot.slane %v689_v50, 4  ;;  %v698_v56 = vrot.slane %v696_v51, 4  ;;  %v690_v58 = vsel %vm1800_vm5, %v1265_v52, %v689_v50  ;;  %v697_v61 = vsel %vm1800_vm5, %v1266_v53, %v696_v51  ;;  %v932_v34 = vld [vmem:[#allocation2 + $0xc] sm:$0xc] }
 0x1c6   :  { %v945_v11 = vrot.slane %v943_v9, 4  ;;  %v1278_v19 = vcombine.low %v659_v18, %v1844_v48  ;;  %v944_v20 = vsel %vm1856_vm11, %v1287_v16, %v943_v9  ;;  %v952_v33 = vrot.slane %v950_v30, 4 }
 0x1c7   :  { %v693_v60 = vsel %vm1800_vm5, %v691_v54, %v692_v55  ;;  %v700_v62 = vsel %vm1800_vm5, %v698_v56, %v699_v57  ;;  %v953_v39 = vrot.slane %v933_v32, 6  ;;  %v1288_v40 = vrot.slane %v932_v34, 10 }
 0x1c8   :  { %v1267_v63 = vcombine.low %v690_v58, %v693_v60  ;;  %v1268_v0 = vcombine.low %v697_v61, %v700_v62 }
 0x1c9   :  { %v954_v41 = vsel %vm1856_vm11, %v952_v33, %v953_v39  ;;  %v951_v42 = vsel %vm1856_vm11, %v1288_v40, %v950_v30 }
 0x1ca   :  { %1428 = vmatprep.mubr.bf16.mxu1 %v1267_v63  ;;  %v1290_v43 = vcombine.low %v951_v42, %v954_v41 }
 0x1cb   :  { %1429 = vmatmul.mubr.bf16.vlgmr.msra.gmra.mrb[0].mxu1 %v1268_v0 }
 0x1cc   :  { %1433 = vmatpush3.bf16.msra.mxu1 %v1820_v59  ;;  %1448 = vmatprep.mubr.bf16.mxu1 %v1277_v3  ;;  %v931_v59 = vld [vmem:[#allocation2 + $0x8] sm:$0x3] }
 0x1cd   :  { %1434 = vmatprep.subr.bf16.mxu1 %v1541_v2  ;;  %v946_v14 = vrot.slane %v931_v59, 6 }
 0x1cf   :  { %v947_v17 = vsel %vm1856_vm11, %v945_v11, %v946_v14  ;;  %v1114_v14 = vsub.s32 2, %v1823_v21 }
 0x1d0   :  { %1435 = vmatpush3.bf16.msra.mxu1 %v1541_v2  ;;  %v1289_v24 = vcombine.low %v944_v20, %v947_v17  ;;  %v1123_v20 = vrot.slane %v1828_v22, %v1122_v15 }
 0x1d1   :  { %1436 = vmatprep.subr.bf16.mxu1 %v1542_v4 }
 0x1d4   :  { %1437 = vmatpush3.bf16.msra.mxu1 %v1542_v4 }
 0x1d5   :  { %1438 = vmatprep.subr.bf16.mxu1 %v1543_v5 }
 0x1d8   :  { %1439 = vmatpush3.bf16.msra.mxu1 %v1543_v5 }
 0x1d9   :  { %1440 = vmatprep.subr.bf16.mxu1 %v1544_v6 }
 0x1dc   :  { %1441 = vmatpush3.bf16.msra.mxu1 %v1544_v6 }
 0x1dd   :  { %1442 = vmatprep.subr.bf16.mxu1 %v1545_v8 }
 0x1e0   :  { %1443 = vmatpush3.bf16.msra.mxu1 %v1545_v8 }
 0x1e1   :  { %1444 = vmatprep.subr.bf16.mxu1 %v1546_v7 }
 0x1e4   :  { %1445 = vmatpush3.bf16.msra.mxu1 %v1546_v7 }
 0x1e5   :  { %1446 = vmatprep.subr.bf16.mxu1 %v1547_v10 }
 0x1e8   :  { %1447 = vmatpush3.bf16.msra.mxu1 %v1547_v10 }
 0x1e9   :  { %1452 = vmatprep.subr.bf16.mxu1 %v1549_v13 }
 0x1eb   :  { %1449 = vmatmul.mubr.bf16.vlgmr.msra.gmra.mrb[0].mxu1 %v1278_v19 }
 0x1ec   :  { %1453 = vmatpush3.bf16.msra.mxu1 %v1549_v13  ;;  %1468 = vmatprep.mubr.bf16.mxu1 %v1289_v24  ;;  %v1169_v13 = vsub.s32 5, %v1823_v21 }
 0x1ed   :  { %1454 = vmatprep.subr.bf16.mxu1 %v1550_v23 }
 0x1ee   :  { %v1170_v18 = vrot.slane %v1828_v22, %v1169_v13 }
 0x1f0   :  { %1455 = vmatpush3.bf16.msra.mxu1 %v1550_v23  ;;  %v1173_v21 = vadd.f32 %v1170_v18, %v1838_v38 }
 0x1f1   :  { %1456 = vmatprep.subr.bf16.mxu1 %v1551_v26 }
 0x1f4   :  { %1457 = vmatpush3.bf16.msra.mxu1 %v1551_v26 }
 0x1f5   :  { %1458 = vmatprep.subr.bf16.mxu1 %v1552_v27 }
 0x1f8   :  { %1459 = vmatpush3.bf16.msra.mxu1 %v1552_v27 }
 0x1f9   :  { %1460 = vmatprep.subr.bf16.mxu1 %v1553_v25 }
 0x1fc   :  { %1461 = vmatpush3.bf16.msra.mxu1 %v1553_v25  ;;  %v1174_v25 = vadd.f32 %v1170_v18, %v1832_v35 }
 0x1fd   :  { %1462 = vmatprep.subr.bf16.mxu1 %v1554_v28 }
 0x200   :  { %1463 = vmatpush3.bf16.msra.mxu1 %v1554_v28  ;;  %v1172_v28 = vadd.f32 %v1170_v18, %v1834_v36 }
 0x201   :  { %1464 = vmatprep.subr.bf16.mxu1 %v1555_v29 }
 0x204   :  { %1465 = vmatpush3.bf16.msra.mxu1 %v1555_v29  ;;  %v1171_v29 = vadd.f32 %v1170_v18, %v1836_v37 }
 0x205   :  { %1466 = vmatprep.subr.bf16.mxu1 %v1556_v31 }
 0x208   :  { %1467 = vmatpush3.bf16.msra.mxu1 %v1556_v31 }
 0x20b   :  { %1469 = vmatmul.mubr.bf16.vlgmr.msra.gmra.mrb[0].mxu1 %v1290_v43 }
 0x2de   :  { %v1470_v44 = vpop.f32.mrb[0].mxu1 }
 0x2df   :  { %v1062_v45 = vpop.f32.mrb[1].mxu1 }
 0x2e0   :  { %v1471_v46 = vpop.f32.mrb[2].mxu1 }
 0x2e1   :  { %v1065_v47 = vpop.f32.mrb[3].mxu1 }
 0x2e2   :  { %v1081_v48 = vadd.f32 %v1065_v47, %v1062_v45 }
 0x2e4   :  { %v1082_v49 = vadd.f32 %v1470_v44, %v1081_v48 }
 0x2e6   :  { %v1083_v50 = vadd.f32 %v1471_v46, %v1082_v49 }
 0x2e8   :  { %v1084_v51 = vrot.slane %v1083_v50, 4 }
 0x2ea   :  { %v1085_v52 = vadd.f32 %v1084_v51, %v1083_v50 }
 0x2ec   :  { %v1086_v53 = vrot.slane %v1085_v52, 2 }
 0x2ee   :  { %v1087_v54 = vadd.f32 %v1086_v53, %v1085_v52 }
 0x2f0   :  { %v1088_v55 = vrot.slane %v1087_v54, 1 }
 0x2f2   :  { %v1089_v56 = vadd.f32 %v1088_v55, %v1087_v54 }
 0x2f4   :  { %v1090_v57 = vmul.f32 0.03125, %v1089_v56 }
 0x2f6   :  { %v1091_v58 = vsub.f32 %v1062_v45, %v1090_v57  ;;  %v1092_v60 = vsub.f32 %v1065_v47, %v1090_v57  ;;  %v1093_v61 = vsub.f32 %v1470_v44, %v1090_v57  ;;  %v1094_v62 = vsub.f32 %v1471_v46, %v1090_v57 }
 0x2f8   :  { %v1095_v63 = vmul.f32 %v1091_v58, %v1091_v58  ;;  %v1096_v0 = vmul.f32 %v1092_v60, %v1092_v60  ;;  %v1097_v1 = vmul.f32 %v1093_v61, %v1093_v61  ;;  %v1098_v3 = vmul.f32 %v1094_v62, %v1094_v62 }
 0x2fa   :  { %v1099_v2 = vadd.f32 %v1096_v0, %v1095_v63 }
 0x2fc   :  { %v1100_v4 = vadd.f32 %v1099_v2, %v1097_v1 }
 0x2fe   :  { %v1101_v5 = vadd.f32 %v1100_v4, %v1098_v3 }
 0x300   :  { %v1102_v6 = vrot.slane %v1101_v5, 4 }
 0x302   :  { %v1103_v8 = vadd.f32 %v1102_v6, %v1101_v5 }
 0x304   :  { %v1104_v7 = vrot.slane %v1103_v8, 2 }
 0x306   :  { %v1105_v9 = vadd.f32 %v1104_v7, %v1103_v8 }
 0x308   :  { %v1106_v10 = vrot.slane %v1105_v9, 1 }
 0x30a   :  { %v1107_v59 = vadd.f32 %v1106_v10, %v1105_v9 }
 0x30c   :  { %v1108_v11 = vmul.f32 0.03125, %v1107_v59 }
 0x30e   :  { %v1109_v12 = vadd.f32 1e-05, %v1108_v11 }
 0x310   :  { %1561 = vrsqrt.f32 %v1109_v12 }
 0x31a   :  { %v1562_v16 = vpop.eup %1561 }
 0x31b   :  { %v1111_v17 = vmul.f32 %v1562_v16, %v1828_v22 }
 0x31d   :  { %v1115_v19 = vrot.slane %v1111_v17, %v1114_v14 }
 0x31f   :  { %v1116_v23 = vmul.f32 %v1115_v19, %v1091_v58  ;;  %v1117_v24 = vmul.f32 %v1115_v19, %v1092_v60  ;;  %v1118_v26 = vmul.f32 %v1115_v19, %v1093_v61  ;;  %v1119_v27 = vmul.f32 %v1115_v19, %v1094_v62 }
 0x321   :  { %v1125_v30 = vadd.f32 %v1123_v20, %v1117_v24  ;;  %v1124_v31 = vadd.f32 %v1123_v20, %v1116_v23  ;;  %v1126_v32 = vadd.f32 %v1123_v20, %v1118_v26  ;;  %v1127_v33 = vadd.f32 %v1123_v20, %v1119_v27 }
 0x323   :  { %v1176_v34 = vadd.f32 %v1172_v28, %v1125_v30  ;;  %v1175_v39 = vadd.f32 %v1171_v29, %v1124_v31  ;;  %v1177_v40 = vadd.f32 %v1173_v21, %v1126_v32  ;;  %v1178_v22 = vadd.f32 %v1174_v25, %v1127_v33 }
 0x325   :  { %v1180_v41 = vmax.f32 %v1176_v34, 0.0  ;;  %v1179_v42 = vmax.f32 %v1175_v39, 0.0  ;;  %v1181_v43 = vmax.f32 %v1177_v40, 0.0  ;;  %v1182_v35 = vmax.f32 %v1178_v22, 0.0 }
 0x327   :  { %v1314_v44 = vpack.c.bf16 %v1180_v41, %v1179_v42  ;;  %v1319_v36 = vpack.c.bf16 %v1182_v35, %v1181_v43 }
 0x329   :  { %1315 = vst [vmem:[#allocation9] sm:$0xff] %v1314_v44   ;;  %1321 = vst [vmem:[#allocation9 + $0x8] sm:$0xff] %v1319_v36  }
 0x32a   :  { %1640 = shalt.err (!%p1637_p0)
}
 0x32b   :  { %s1641_s7 = scalar_lea.hbm %s1900_s5, 256 }
 0x32c   :  { %p1642_p1 = scmp.ne.s32.totalorder %s1900_s5, %s1641_s7  ;;  %p1645_p2 = scmp.lt.u32.totalorder %s1641_s7, %s1900_s5 }
 0x32e   :  { %p1647_p3 = pnand %p1645_p2, %p1642_p1 }
 0x330   :  { %1650 = shalt.err (!%p1647_p3)
}
 0x331   :  { %1214 = dma.vmem_to_hbm [thread:$0]  %s1209_s27, 256, %s1900_s5, [#allocation5], %s1658_s28, %s1658_s28, %s1659_s29  }
 0x332   :  { %1655 = dma.done.wait [#allocation5], 256  }
 0x333   :  { %1656 = vsyncadd [#allocation5], 4294967040 }
 0x334   :  { %1218 = vsyncpa [#allocation4], 1 }
 0x335   :  { %1219 = vsyncpa [#allocation7], 1 }
 0x336   :  { %1220 = vsyncpa [#allocation5], 1 }

</bundles_post_ra>
